<compile_context>
chip_gen: v6e
topology: v6e:2x2x1
jax: 0.10.0
libtpu: 0.0.40
codegen_flags: <defaults>
</compile_context>

<pallas_src>
import functools

import jax
import jax.numpy as jnp
from jax import lax
from jax.experimental import pallas as pl
from jax.experimental.pallas import tpu as pltpu


# ----------------------------- Pallas kernel -------------------------------
def _partial_conv_kernel(xt_ref, msum_ref, w_ref, b_ref, out_ref, nm_ref):
    """One lane-dense tile of TP output positions.

    xt_ref  : (K, TP)     bf16  im2col'd (x*mask) patches, positions on lanes
    msum_ref: (1, TP)     f32   mask-conv result (sum of mask in each window)
    w_ref   : (Cout, K)   bf16  flattened feature_conv weight
    b_ref   : (Cout, 1)   f32   feature_conv bias
    out_ref : (Cout, TP)  f32   partial-conv output
    nm_ref  : (1, TP)     f32   new mask (1 where the window saw any valid px)
    """
    # feature_conv(x * mask) without bias -> one MXU matmul with f32 accumulate
    conv = jnp.dot(w_ref[...], xt_ref[...], preferred_element_type=jnp.float32)

    msum = msum_ref[...]                       # (1, TP), integer-valued f32
    holes = msum == 0.0
    safe_msum = jnp.where(holes, 1.0, msum)

    # (output - bias) / mask_sum + bias, zeroed at holes.
    # Divide -> approximate EUP reciprocal (msum is integer-valued, exactness
    # not required).
    inv = pl.reciprocal(safe_msum, approx=True)
    out = conv * inv + b_ref[...]              # (Cout,TP)*(1,TP) + (Cout,1)
    out = jnp.where(holes, 0.0, out)

    out_ref[...] = out.astype(out_ref.dtype)
    nm_ref[...] = jnp.where(holes, 0.0, 1.0).astype(nm_ref.dtype)


# ------------------------------- glue ---------------------------------------
def _round_up(x, m):
    return ((x + m - 1) // m) * m


def _choose_row_tile(p, max_tp=2048):
    """Largest 128-multiple position tile <= max_tp, but keep >= 2 grid steps
    when possible so the grid can shard across v7x's two TensorCores."""
    p128 = _round_up(p, 128)
    tp = min(max_tp, p128)
    if tp > 128 and p128 // tp < 2:
        tp = max(128, _round_up(p128 // 2, 128))
    return tp


def _im2col_t(x, kh, kw, stride, padding):
    """x: (N, C, H, W) -> patches^T of shape (C*KH*KW, N*OH*OW).

    Row index is c*KH*KW + i*KW + j (matches weight.reshape(Cout, -1));
    column index is n*OH*OW + oh*OW + ow.
    """
    n, c, h, w = x.shape
    xp = jnp.pad(x, ((0, 0), (0, 0), (padding, padding), (padding, padding)))
    oh = (h + 2 * padding - kh) // stride + 1
    ow = (w + 2 * padding - kw) // stride + 1
    cols = []
    for i in range(kh):
        for j in range(kw):
            cols.append(xp[:, :, i:i + stride * oh:stride, j:j + stride * ow:stride])
    cols = jnp.stack(cols, axis=2)                  # (N, C, KH*KW, OH, OW)
    cols = cols.transpose(1, 2, 0, 3, 4)            # (C, KH*KW, N, OH, OW)
    return cols.reshape(c * kh * kw, n * oh * ow), oh, ow


@functools.partial(jax.jit, static_argnames=("stride", "padding"))
def partial_conv(x, mask, weight, bias, *, stride=1, padding=0):
    """x, mask: (N, C, H, W); weight: (Cout, Cin, KH, KW); bias: (Cout,).

    Returns (output, new_mask), both (N, Cout, OH, OW) — matches the PyTorch
    PartialConv.forward semantics.
    """
    n, c, h, w = x.shape
    cout, cin, kh, kw = weight.shape
    assert cin == c
    k = c * kh * kw

    # Pre-multiply x * mask once (cheap, NCHW) instead of streaming a second
    # full-size mask-patch matrix through the kernel; reduce the all-ones
    # mask_conv to a per-position scalar (channel sum + KHxKW box filter).
    xm = (x * mask).astype(jnp.float32)
    # TODO(synk): im2col is still materialized in HBM by the wrapper (KH*KW
    # read inflation); a halo'd implicit-GEMM needs manual DMA since
    # block-indexed BlockSpecs cannot express overlapping windows.
    xt_cols, oh, ow = _im2col_t(xm, kh, kw, stride, padding)          # (K, P)
    m_csum = jnp.sum(mask.astype(jnp.float32), axis=1, keepdims=True)
    m_cols, _, _ = _im2col_t(m_csum, kh, kw, stride, padding)         # (KH*KW, P)
    msum = jnp.sum(m_cols, axis=0, keepdims=True)                     # (1, P)

    p = n * oh * ow
    tp = _choose_row_tile(p)
    p_pad = _round_up(p, tp)
    if p_pad != p:
        # Padded positions have msum == 0 -> treated as holes -> output 0,
        # sliced off below.  (Invariant: position padding must stay zero.)
        xt_cols = jnp.pad(xt_cols, ((0, 0), (0, p_pad - p)))
        msum = jnp.pad(msum, ((0, 0), (0, p_pad - p)))

    # bf16 for the large MXU streams; f32 accumulation inside the kernel.
    xt_cols = xt_cols.astype(jnp.bfloat16)
    w_mat = weight.reshape(cout, k).astype(jnp.bfloat16)              # (Cout, K)
    b_col = bias.reshape(cout, 1).astype(jnp.float32)                 # (Cout, 1)

    grid = (p_pad // tp,)
    out_flat, nm_flat = pl.pallas_call(
        _partial_conv_kernel,
        out_shape=(
            jax.ShapeDtypeStruct((cout, p_pad), jnp.float32),
            jax.ShapeDtypeStruct((1, p_pad), jnp.float32),
        ),
        grid_spec=pltpu.PrefetchScalarGridSpec(
            num_scalar_prefetch=0,
            grid=grid,
            in_specs=[
                pl.BlockSpec((k, tp), lambda i: (0, i)),       # patches^T
                pl.BlockSpec((1, tp), lambda i: (0, i)),       # mask sums
                pl.BlockSpec((cout, k), lambda i: (0, 0)),     # weight (resident)
                pl.BlockSpec((cout, 1), lambda i: (0, 0)),     # bias (resident)
            ],
            out_specs=[
                pl.BlockSpec((cout, tp), lambda i: (0, i)),
                pl.BlockSpec((1, tp), lambda i: (0, i)),
            ],
        ),
        compiler_params=pltpu.CompilerParams(
            dimension_semantics=("parallel",),
            vmem_limit_bytes=32 * 1024 * 1024),
    )(xt_cols, msum, w_mat, b_col)

    out = out_flat[:, :p].reshape(cout, n, oh, ow).transpose(1, 0, 2, 3)
    nm = nm_flat[0, :p].reshape(n, 1, oh, ow)
    new_mask = jnp.broadcast_to(nm, (n, cout, oh, ow))
    return out, new_mask


# ----------------------------- reference -----------------------------------
def _reference(x, mask, weight, bias, stride, padding):
    dn = ("NCHW", "OIHW", "NCHW")
    xm = x * mask
    conv = lax.conv_general_dilated(xm, weight, (stride, stride),
                                    [(padding, padding)] * 2,
                                    dimension_numbers=dn)
    ones_w = jnp.ones_like(weight)
    msum = lax.conv_general_dilated(mask, ones_w, (stride, stride),
                                    [(padding, padding)] * 2,
                                    dimension_numbers=dn)
    holes = msum == 0.0
    safe = jnp.where(holes, 1.0, msum)
    b = bias.reshape(1, -1, 1, 1)
    out = conv / safe + b
    out = jnp.where(holes, 0.0, out)
    new_mask = jnp.where(holes, 0.0, 1.0)
    new_mask = jnp.broadcast_to(new_mask, out.shape)
    return out, new_mask


# ------------------------------- main ---------------------------------------
if __name__ == "__main__":
    # PartialConv(in_channels=4, out_channels=8, kernel_size=3, stride=1, padding=1)
    N, Cin, H, W = 2, 4, 16, 16
    Cout, KH, KW = 8, 3, 3
    stride, padding = 1, 1

    key = jax.random.PRNGKey(0)
    kx, km, kw_, kb = jax.random.split(key, 4)

    x = jax.random.normal(kx, (N, Cin, H, W), dtype=jnp.float32)
    # binary mask with some holes (same shape as x, as in the PyTorch module)
    mask = (jax.random.uniform(km, (N, Cin, H, W)) > 0.4).astype(jnp.float32)

    # kaiming_normal_ (fan_in, gain sqrt(2)) for feature_conv weight
    fan_in = Cin * KH * KW
    weight = jax.random.normal(kw_, (Cout, Cin, KH, KW), dtype=jnp.float32) * jnp.sqrt(2.0 / fan_in)
    # default Conv2d bias init: U(-1/sqrt(fan_in), 1/sqrt(fan_in))
    bound = 1.0 / jnp.sqrt(fan_in)
    bias = jax.random.uniform(kb, (Cout,), minval=-bound, maxval=bound, dtype=jnp.float32)
    # mask_conv weight is constant 1.0 and bias-free -> collapses to the msum
    # box filter fed to the kernel.

    out, new_mask = partial_conv(x, mask, weight, bias, stride=stride, padding=padding)
    jax.block_until_ready((out, new_mask))

    ref_out, ref_mask = _reference(x, mask, weight, bias, stride, padding)
    assert out.shape == (N, Cout, H, W) and new_mask.shape == (N, Cout, H, W)
    # Patch/weight streams are bf16 (perf review); f32 reference comparison
    # therefore uses a bf16-level tolerance.
    assert jnp.allclose(out, ref_out, atol=5e-2, rtol=5e-2), "output mismatch"
    assert jnp.allclose(new_mask, ref_mask), "new_mask mismatch"

    print("KERNEL_OK")
</pallas_src>

<mosaic_0001>
module attributes {stable_mosaic.version = 11 : i64} {
  func.func @_partial_conv_kernel(%arg0: i32, %arg1: memref<36x256xbf16, #tpu.memory_space<vmem>>, %arg2: memref<1x256xf32, #tpu.memory_space<vmem>>, %arg3: memref<8x36xbf16, #tpu.memory_space<vmem>>, %arg4: memref<8x1xf32, #tpu.memory_space<vmem>>, %arg5: memref<8x256xf32, #tpu.memory_space<vmem>>, %arg6: memref<1x256xf32, #tpu.memory_space<vmem>>) attributes {dimension_semantics = [#tpu.dimension_semantics<parallel>], iteration_bounds = array<i64: 2>, scalar_prefetch = 0 : i64, scratch_operands = 0 : i64, tpu.core_type = #tpu.core_type<tc>, window_params = [{transform_indices = @transform_0, window_bounds = array<i64: 36, 256>}, {transform_indices = @transform_1, window_bounds = array<i64: 1, 256>}, {pipeline_mode = #tpu.pipeline_mode<synchronous>, transform_indices = @transform_2, window_bounds = array<i64: 8, 36>}, {pipeline_mode = #tpu.pipeline_mode<synchronous>, transform_indices = @transform_3, window_bounds = array<i64: 8, 1>}, {transform_indices = @transform_4, window_bounds = array<i64: 8, 256>}, {transform_indices = @transform_5, window_bounds = array<i64: 1, 256>}]} {
    %c0 = arith.constant 0 : index
    %c0_0 = arith.constant 0 : index
    %0 = vector.load %arg3[%c0, %c0_0] : memref<8x36xbf16, #tpu.memory_space<vmem>>, vector<8x36xbf16>
    %c0_1 = arith.constant 0 : index
    %c0_2 = arith.constant 0 : index
    %1 = vector.load %arg1[%c0_1, %c0_2] : memref<36x256xbf16, #tpu.memory_space<vmem>>, vector<36x256xbf16>
    %cst = arith.constant dense<0.000000e+00> : vector<8x256xf32>
    %2 = tpu.matmul %0, %1, %cst {dimension_numbers = #tpu.dot_dimension_numbers<[1], [0], [0], [1], [0, 0, 1, 1], [], []>} : vector<8x36xbf16>, vector<36x256xbf16>, vector<8x256xf32> -> vector<8x256xf32>
    %c0_3 = arith.constant 0 : index
    %c0_4 = arith.constant 0 : index
    %3 = vector.load %arg2[%c0_3, %c0_4] : memref<1x256xf32, #tpu.memory_space<vmem>>, vector<1x256xf32>
    %cst_5 = arith.constant 0.000000e+00 : f32
    %4 = vector.broadcast %cst_5 : f32 to vector<1x256xf32>
    %5 = arith.cmpf oeq, %3, %4 : vector<1x256xf32>
    %cst_6 = arith.constant 1.000000e+00 : f32
    %6 = vector.broadcast %cst_6 : f32 to vector<1x256xf32>
    %7 = arith.select %5, %6, %3 : vector<1x256xi1>, vector<1x256xf32>
    %8 = tpu.reciprocal %7 {approx = true} : vector<1x256xf32> -> vector<1x256xf32>
    %9 = vector.broadcast %8 : vector<1x256xf32> to vector<8x256xf32>
    %10 = arith.mulf %2, %9 : vector<8x256xf32>
    %c0_7 = arith.constant 0 : index
    %c0_8 = arith.constant 0 : index
    %11 = vector.load %arg4[%c0_7, %c0_8] : memref<8x1xf32, #tpu.memory_space<vmem>>, vector<8x1xf32>
    %12 = vector.broadcast %11 : vector<8x1xf32> to vector<8x256xf32>
    %13 = arith.addf %10, %12 : vector<8x256xf32>
    %cst_9 = arith.constant 0.000000e+00 : f32
    %14 = vector.shape_cast %5 : vector<1x256xi1> to vector<1x256xi1>
    %15 = vector.broadcast %14 : vector<1x256xi1> to vector<8x256xi1>
    %16 = vector.broadcast %cst_9 : f32 to vector<8x256xf32>
    %17 = arith.select %15, %16, %13 : vector<8x256xi1>, vector<8x256xf32>
    %c0_10 = arith.constant 0 : index
    %c0_11 = arith.constant 0 : index
    %18 = vector.load %arg5[%c0_10, %c0_11] : memref<8x256xf32, #tpu.memory_space<vmem>>, vector<8x256xf32>
    tpu.vector_store %arg5[%c0_10, %c0_11], %17 {strides = array<i32>} : memref<8x256xf32, #tpu.memory_space<vmem>>, vector<8x256xf32>,
    %cst_12 = arith.constant 0.000000e+00 : f32
    %cst_13 = arith.constant 1.000000e+00 : f32
    %19 = vector.broadcast %cst_12 : f32 to vector<1x256xf32>
    %20 = vector.broadcast %cst_13 : f32 to vector<1x256xf32>
    %21 = arith.select %5, %19, %20 : vector<1x256xi1>, vector<1x256xf32>
    %c0_14 = arith.constant 0 : index
    %c0_15 = arith.constant 0 : index
    %22 = vector.load %arg6[%c0_14, %c0_15] : memref<1x256xf32, #tpu.memory_space<vmem>>, vector<1x256xf32>
    tpu.vector_store %arg6[%c0_14, %c0_15], %21 {strides = array<i32>} : memref<1x256xf32, #tpu.memory_space<vmem>>, vector<1x256xf32>,
    return
  }
  func.func @transform_0(%arg0: i32) -> (i32, i32) {
    %c0_i32 = arith.constant 0 : i32
    %c0_i32_0 = arith.constant 0 : i32
    return %c0_i32, %arg0 : i32, i32
  }
  func.func @transform_1(%arg0: i32) -> (i32, i32) {
    %c0_i32 = arith.constant 0 : i32
    %c0_i32_0 = arith.constant 0 : i32
    return %c0_i32, %arg0 : i32, i32
  }
  func.func @transform_2(%arg0: i32) -> (i32, i32) {
    %c0_i32 = arith.constant 0 : i32
    %c0_i32_0 = arith.constant 0 : i32
    %c0_i32_1 = arith.constant 0 : i32
    return %c0_i32, %c0_i32_0 : i32, i32
  }
  func.func @transform_3(%arg0: i32) -> (i32, i32) {
    %c0_i32 = arith.constant 0 : i32
    %c0_i32_0 = arith.constant 0 : i32
    %c0_i32_1 = arith.constant 0 : i32
    return %c0_i32, %c0_i32_0 : i32, i32
  }
  func.func @transform_4(%arg0: i32) -> (i32, i32) {
    %c0_i32 = arith.constant 0 : i32
    %c0_i32_0 = arith.constant 0 : i32
    return %c0_i32, %arg0 : i32, i32
  }
  func.func @transform_5(%arg0: i32) -> (i32, i32) {
    %c0_i32 = arith.constant 0 : i32
    %c0_i32_0 = arith.constant 0 : i32
    return %c0_i32, %arg0 : i32, i32
  }
}

</mosaic_0001>

<bundles_post_ra>
// kernel: mul.1
= control target key start
LH: loop header
LB: loop body
LE: loop exit
PB: predicated region body
PF: predicated region fallthrough
CT: control target
= control target key end

     0   :  { %3 = vsyncpa [#allocation1], 0  ;;  %s356_s0 = inlined_call_operand.hbm [shape: f32[2,4,16,16], index: 0, kind: input, shape index: {}]   ;;  %s357_s1 = inlined_call_operand.hbm [shape: f32[2,4,16,16], index: 1, kind: input, shape index: {}]   ;;  %s358_s2 = inlined_call_operand.vmem [shape: bf16[2,4,16,16], index: 2, kind: output, shape index: {}]  }
   0x1   :  { %4 = vsyncpa [#allocation3], 0  ;;  %s266_s9 = smov [#allocation0]  }
   0x2   :  { %s8_s10 = sshll.u32 %s266_s9, 4  ;;  %s9_s10 = int_to_ptr.vmem [resolvable:$true] %s8_s10 }
   0x3   :  { %s230_s11 = scalar_lea.vmem %s9_s10, 2048  ;;  %p235_p1 = scmp.lt.s32.totalorder %s9_s10, %s9_s10 }
   0x4   :  { %p231_p0 = scmp.ne.s32.totalorder %s9_s10, %s230_s11  ;;  %p236_p2 = scmp.lt.s32.totalorder %s230_s11, %s230_s11 }
   0x6   :  { %p237_p3 = por %p236_p2, %p235_p1 }
   0x8   :  { %p238_p4 = pnand %p237_p3, %p231_p0 }
   0xa   :  { %241 = shalt.err (!%p238_p4)
}
   0xb   :  { %s267_s12 = smov 128   ;;  %s268_s13 = smov 8  }
   0xc   :  { %14 = dma.hbm_to_vmem [thread:$0]  %s356_s0, 2048, %s9_s10, [#allocation1], %s267_s12, %s267_s12, %s268_s13  }
   0xd   :  { %s269_s0 = smov [#allocation2]  }
   0xe   :  { %s18_s16 = sshll.u32 %s269_s0, 4  ;;  %s19_s16 = int_to_ptr.vmem [resolvable:$true] %s18_s16 }
   0xf   :  { %s250_s17 = scalar_lea.vmem %s19_s16, 2048  ;;  %p255_p6 = scmp.lt.s32.totalorder %s19_s16, %s19_s16 }
  0x10   :  { %p251_p5 = scmp.ne.s32.totalorder %s19_s16, %s250_s17  ;;  %p256_p7 = scmp.lt.s32.totalorder %s250_s17, %s250_s17 }
  0x12   :  { %p257_p8 = por %p256_p7, %p255_p6 }
  0x14   :  { %p258_p9 = pnand %p257_p8, %p251_p5 }
  0x16   :  { %261 = shalt.err (!%p258_p9)
}
  0x17   :  { %24 = dma.hbm_to_vmem [thread:$0]  %s357_s1, 2048, %s19_s16, [#allocation3], %s267_s12, %s267_s12, %s268_s13  }
  0x18   :  { %262 = dma.done.wait [#allocation1], 2048  }
  0x19   :  { %263 = vsyncadd [#allocation1], 4294965248 }
  0x1a   :  { %264 = dma.done.wait [#allocation3], 2048  }
  0x1b   :  { %265 = vsyncadd [#allocation3], 4294965248  ;;  %v27_v0 = vld [vmem:[#allocation0] sm:$0xff]  ;;  %v47_v5 = vld [vmem:[#allocation0 + $0x10] sm:$0xff]  ;;  %v270_v12 = vmov 0.0  }
  0x1c   :  { %v28_v1 = vld [vmem:[#allocation2] sm:$0xff]  ;;  %v49_v6 = vld [vmem:[#allocation2 + $0x10] sm:$0xff]  ;;  %v113_v28 = vld [vmem:[#allocation0 + $0x8] sm:$0xff] }
  0x1d   :  { %v36_v2 = vld [vmem:[#allocation0 + $0x40] sm:$0xff]  ;;  %v31_v3 = vmul.f32 %v28_v1, %v27_v0  ;;  %v52_v8 = vmul.f32 %v49_v6, %v47_v5  ;;  %v58_v9 = vld [vmem:[#allocation0 + $0x50] sm:$0xff]  ;;  %v115_v29 = vld [vmem:[#allocation2 + $0x8] sm:$0xff] }
  0x1e   :  { %v38_v4 = vld [vmem:[#allocation2 + $0x40] sm:$0xff]  ;;  %v60_v10 = vld [vmem:[#allocation2 + $0x50] sm:$0xff]  ;;  %v118_v33 = vmul.f32 %v115_v29, %v113_v28  ;;  %v124_v34 = vld [vmem:[#allocation0 + $0x48] sm:$0xff] }
  0x1f   :  { %v41_v7 = vmul.f32 %v38_v4, %v36_v2  ;;  %v69_v11 = vld [vmem:[#allocation0 + $0x20] sm:$0xff]  ;;  %v33_v13 = vpack.c.bf16 %v270_v12, %v31_v3  ;;  %v63_v14 = vmul.f32 %v60_v10, %v58_v9  ;;  %v55_v19 = vpack.c.bf16 %v270_v12, %v52_v8  ;;  %v91_v22 = vld [vmem:[#allocation0 + $0x30] sm:$0xff]  ;;  %v126_v35 = vld [vmem:[#allocation2 + $0x48] sm:$0xff] }
  0x20   :  { %v71_v15 = vld [vmem:[#allocation2 + $0x20] sm:$0xff]  ;;  %v93_v23 = vld [vmem:[#allocation2 + $0x30] sm:$0xff]  ;;  %v135_v36 = vld [vmem:[#allocation0 + $0x18] sm:$0xff]  ;;  %v129_v38 = vmul.f32 %v126_v35, %v124_v34  ;;  %v121_v43 = vpack.c.bf16 %v270_v12, %v118_v33 }
  0x21   :  { %v80_v16 = vld [vmem:[#allocation0 + $0x60] sm:$0xff]  ;;  %v44_v18 = vpack.c.bf16 %v270_v12, %v41_v7  ;;  %v74_v20 = vmul.f32 %v71_v15, %v69_v11  ;;  %v102_v24 = vld [vmem:[#allocation0 + $0x70] sm:$0xff]  ;;  %34 = vst [vmem:[%s358_s2] sm:$0xf] %v33_v13  ;;  %v66_v25 = vpack.c.bf16 %v270_v12, %v63_v14  ;;  %v96_v26 = vmul.f32 %v93_v23, %v91_v22  ;;  %v137_v39 = vld [vmem:[#allocation2 + $0x18] sm:$0xff] }
  0x22   :  { %v82_v17 = vld [vmem:[#allocation2 + $0x60] sm:$0xff]  ;;  %v104_v27 = vld [vmem:[#allocation2 + $0x70] sm:$0xff]  ;;  %203 = vst [vmem:[%s358_s2 + $0x8] sm:$0xf] %v55_v19  ;;  %v146_v40 = vld [vmem:[#allocation0 + $0x58] sm:$0xff]  ;;  %v140_v44 = vmul.f32 %v137_v39, %v135_v36  ;;  %v132_v49 = vpack.c.bf16 %v270_v12, %v129_v38 }
  0x23   :  { %v85_v21 = vmul.f32 %v82_v17, %v80_v16  ;;  %202 = vst [vmem:[%s358_s2 + $0x20] sm:$0xf] %v44_v18  ;;  %v77_v30 = vpack.c.bf16 %v270_v12, %v74_v20  ;;  %v107_v32 = vmul.f32 %v104_v27, %v102_v24  ;;  %204 = vst [vmem:[%s358_s2 + $0x28] sm:$0xf] %v66_v25  ;;  %v148_v41 = vld [vmem:[#allocation2 + $0x58] sm:$0xff]  ;;  %v157_v46 = vld [vmem:[#allocation0 + $0x28] sm:$0xff] }
  0x24   :  { %v99_v37 = vpack.c.bf16 %v270_v12, %v96_v26  ;;  %v151_v45 = vmul.f32 %v148_v41, %v146_v40  ;;  %v159_v47 = vld [vmem:[#allocation2 + $0x28] sm:$0xff]  ;;  %v179_v52 = vld [vmem:[#allocation0 + $0x38] sm:$0xff]  ;;  %209 = vst [vmem:[%s358_s2 + $0x4] sm:$0xf] %v121_v43  ;;  %v143_v54 = vpack.c.bf16 %v270_v12, %v140_v44  ;;  %210 = vst [vmem:[%s358_s2 + $0x24] sm:$0xf] %v132_v49 }
  0x25   :  { %v88_v31 = vpack.c.bf16 %v270_v12, %v85_v21  ;;  %205 = vst [vmem:[%s358_s2 + $0x10] sm:$0xf] %v77_v30  ;;  %v110_v42 = vpack.c.bf16 %v270_v12, %v107_v32  ;;  %v168_v48 = vld [vmem:[#allocation0 + $0x68] sm:$0xff]  ;;  %v162_v50 = vmul.f32 %v159_v47, %v157_v46  ;;  %v181_v53 = vld [vmem:[#allocation2 + $0x38] sm:$0xff] }
  0x26   :  { %207 = vst [vmem:[%s358_s2 + $0x18] sm:$0xf] %v99_v37  ;;  %v170_v51 = vld [vmem:[#allocation2 + $0x68] sm:$0xff]  ;;  %v154_v55 = vpack.c.bf16 %v270_v12, %v151_v45  ;;  %v184_v57 = vmul.f32 %v181_v53, %v179_v52  ;;  %v190_v58 = vld [vmem:[#allocation0 + $0x78] sm:$0xff]  ;;  %211 = vst [vmem:[%s358_s2 + $0xc] sm:$0xf] %v143_v54 }
  0x27   :  { %206 = vst [vmem:[%s358_s2 + $0x30] sm:$0xf] %v88_v31  ;;  %208 = vst [vmem:[%s358_s2 + $0x38] sm:$0xf] %v110_v42  ;;  %v173_v56 = vmul.f32 %v170_v51, %v168_v48  ;;  %v192_v59 = vld [vmem:[#allocation2 + $0x78] sm:$0xff]  ;;  %v165_v60 = vpack.c.bf16 %v270_v12, %v162_v50 }
  0x28   :  { %v195_v61 = vmul.f32 %v192_v59, %v190_v58  ;;  %212 = vst [vmem:[%s358_s2 + $0x2c] sm:$0xf] %v154_v55  ;;  %v187_v63 = vpack.c.bf16 %v270_v12, %v184_v57 }
  0x29   :  { %v176_v62 = vpack.c.bf16 %v270_v12, %v173_v56  ;;  %213 = vst [vmem:[%s358_s2 + $0x14] sm:$0xf] %v165_v60 }
  0x2a   :  { %v198_v0 = vpack.c.bf16 %v270_v12, %v195_v61  ;;  %215 = vst [vmem:[%s358_s2 + $0x1c] sm:$0xf] %v187_v63 }
  0x2b   :  { %214 = vst [vmem:[%s358_s2 + $0x34] sm:$0xf] %v176_v62 }
  0x2c   :  { %216 = vst [vmem:[%s358_s2 + $0x3c] sm:$0xf] %v198_v0 }
  0x2d   :  { %200 = vsyncpa [#allocation1], 1 }
  0x2e   :  { %201 = vsyncpa [#allocation3], 1 }

// kernel: partial_conv.1
= control target key start
LH: loop header
LB: loop body
LE: loop exit
PB: predicated region body
PF: predicated region fallthrough
CT: control target
= control target key end

     0   :  { %s656_s18 = smov 0   ;;  %s658_s19 = smov 0   ;;  %s728_s0 = inlined_call_operand.vmem [shape: bf16[36,512], index: 0, kind: input, shape index: {}]   ;;  %s729_s1 = inlined_call_operand.vmem [shape: f32[1,512], index: 1, kind: input, shape index: {}]   ;;  %s730_s2 = inlined_call_operand.vmem [shape: bf16[8,36], index: 2, kind: input, shape index: {}]   ;;  %s731_s3 = inlined_call_operand.vmem [shape: f32[8,1], index: 3, kind: input, shape index: {}]   ;;  %s732_s4 = inlined_call_operand.vmem [shape: f32[8,512], index: 4, kind: output, shape index: {0}]   ;;  %s733_s5 = inlined_call_operand.vmem [shape: f32[1,512], index: 5, kind: output, shape index: {1}]  }
   0x1   :  { %s660_s20 = smov 0  }
   0x2 LB: > { %s539_s21 = sadd.s32 4294967295, %s622_s20   ;;  %s673_s22 = sadd.s32 1, %s622_s20   ;;  %s622_s20 = sphi %s660_s20, %s736_s20   ;;  %s618_s19 = sphi %s658_s19, %s735_s19   ;;  %s614_s18 = sphi %s656_s18, %s734_s18  }
   0x3   : > { %s20_s23 = ssub.s32 %s622_s20, %s673_s22  ;;  %s23_s24 = sadd.s32 1, %s618_s19 }
   0x4   : > { %p21_p0 = scmp.eq.s32.totalorder %s20_s23, 0  ;;  %p30_p1 = scmp.ne.s32.totalorder %s618_s19, %s614_s18 }
   0x5   : > { %p31_p2 = scmp.eq.s32.totalorder %s622_s20, 0  ;;  %p542_p4 = scmp.ge.s32.totalorder %s622_s20, 2 }
   0x6   : > { %s682_s25 = scalar_select %p21_p0, %s618_s19, %s23_s24  }
   0x7   : > { %p32_p3 = por %p31_p2, %p30_p1  ;;  %182 = sbr.rel (%p542_p4) target bundleno = 19 (0x13), region = 24 }
   0xc   : > { %185 = sbr.rel (!%p32_p3) target bundleno = 19 (0x13), region = 28  ;;  %s187_s26 = sand.u32 (%p32_p3), 1, %s618_s19  }
   0xd   : > { %s560_s27 = sshll.u32 (%p32_p3), %s622_s20, 3  ;;  %s561_s28 = smul.u32 (%p32_p3), 40, %s187_s26 }
   0xe   : > { %s192_s6 = scalar_lea.vmem (%p32_p3), %s728_s0, %s560_s27 }
   0xf   : > { %v229_v0 = vld [vmem:[%s192_s6] sm:$0xff] (%p32_p3)  ;;  %v231_v1 = vld [vmem:[%s192_s6 + $0x10] sm:$0xff] (%p32_p3)  ;;  %s189_s7 = scalar_lea.vmem (%p32_p3), [#allocation2], %s561_s28 }
  0x10   : > { %v233_v2 = vld [vmem:[%s192_s6 + $0x20] sm:$0xff] (%p32_p3)  ;;  %v235_v3 = vld [vmem:[%s192_s6 + $0x30] sm:$0xff] (%p32_p3)  ;;  %230 = vst [vmem:[%s189_s7] sm:$0xff] (%p32_p3), %v229_v0  ;;  %232 = vst [vmem:[%s189_s7 + $0x8] sm:$0xff] (%p32_p3), %v231_v1 }
  0x11   : > { %v237_v4 = vld [vmem:[%s192_s6 + $0x40] sm:$0xff]  ;;  %234 = vst [vmem:[%s189_s7 + $0x10] sm:$0xff] %v233_v2  ;;  %236 = vst [vmem:[%s189_s7 + $0x18] sm:$0xff] %v235_v3 }
  0x12   : > { %238 = vst [vmem:[%s189_s7 + $0x20] sm:$0xff] %v237_v4 }
  0x13 PF: > { %p545_p5 = scmp.ge.s32.totalorder %s622_s20, 1  ;;  %p251_p6 = scmp.lt.s32.totalorder %s622_s20, 3 }
  0x15   : > { %p252_p7 = pnand %p545_p5, %p251_p6 }
  0x16   : > { %s258_s8 = sand.u32 (!%p252_p7), 1, %s614_s18   ;;  %s546_s9 = sshll.u32 (!%p252_p7), %s539_s21, 1 }
  0x17   : > { %255 = sbr.rel (%p252_p7) target bundleno = 245 (0xf5), region = 70  ;;  %p295_p8 = scmp.lt.s32.totalorder (!%p252_p7), %s546_s9, 3 }
  0x18   : > { %s562_s10 = smul.u32 (!%p252_p7), 40, %s258_s8 }
  0x1a   : > { %s260_s13 = scalar_lea.vmem (!%p252_p7), [#allocation2], %s562_s10 }
  0x1c   : > { %v624_v5 = vmov 0   ;;  %v411_v6 = vld [vmem:[%s731_s3] sm:$0xff]  ;;  %vm346_vm0 = vcmask 1041408   ;;  %s738_s9 = smov (!%p295_p8, %s546_s9), 3  ;;  %vm342_vm2 = vcmask 293888   ;;  %v399_v19 = vlaneseq }
  0x1d   : > { %385 = vmatprep.mubr.bf16.mxu0 %v624_v5  ;;  %589 = vset.pattern.permute.xlu0 %v624_v5  ;;  %v316_v7 = vld [vmem:[%s260_s13 + $0x20] sm:$0x33]  ;;  %v592_v10 = vld [vmem:[%s260_s13 + $0x14] ss:$8 sps:$4 sm:$0xff]   ;;  %s297_s16 = scalar_lea.vmem %s729_s1, %s738_s9  ;;  %v594_v13 = vld [vmem:[%s260_s13 + $0x10] ss:$8 sps:$4 sm:$0xff]   ;;  %s308_s23 = scalar_lea.vmem %s733_s5, %s738_s9 }
  0x1e   : > { %414 = vperm.xlu0 %589, %v411_v6   ;;  %v555_v8 = vcombine.high %v316_v7, %v316_v7  ;;  %v554_v9 = vcombine.low %v316_v7, %v316_v7  ;;  %v394_v12 = vld [vmem:[%s297_s16] sm:$0x3]  ;;  %v595_v14 = vld [vmem:[%s260_s13 + $0x4] ss:$8 sps:$4 sm:$0xff]   ;;  %v400_v20 = vshrl.u32 %v399_v19, 7  ;;  %v625_v23 = vmov 1.0  }
  0x1f   : > { %vm395_vm1 = vcmp.eq.f32.partialorder %v394_v12, 0.0  ;;  %v597_v17 = vld [vmem:[%s260_s13] ss:$8 sps:$4 sm:$0xff]   ;;  %vm437_vm3 = vcmp.lt.s32.totalorder %v399_v19, 256  ;;  %s548_s24 = sshll.u32 %s738_s9, 3 }
  0x20   : > { %556 = vmatprep.subr.msk.bf16.mxu0 %vm346_vm0, %v555_v8  ;;  %v348_v11 = vsel %vm346_vm0, %v554_v9, 0  ;;  %v396_v15 = vsel %vm395_vm1, 1.0, %v394_v12  ;;  %v419_v16 = vsel %vm395_vm1, 1, %v624_v5  ;;  %v311_v18 = vld [vmem:[%s730_s2] sm:$0xf]  ;;  %v401_v22 = vsub.s32 0, %v400_v20  ;;  %s303_s28 = scalar_lea.vmem %s732_s4, %s548_s24 }
  0x21   : > { %364 = vmatpush1.bf16.msra.mxu0 %v348_v11  ;;  %598 = vrcp.f32 %v396_v15  ;;  %v434_v24 = vsel %vm395_vm1, 0.0, %v625_v23  ;;  %v405_v26 = vsub.s32 1, %v400_v20 }
  0x22   : > { %365 = vmatprep.subr.bf16.mxu0 %v592_v10  ;;  %439 = vst.msk [vmem:[%s308_s23] sm:$0x3] %vm437_vm3, %v434_v24  ;;  %v423_v28 = vrot.slane %v419_v16, %v401_v22 }
  0x23   : > { %v427_v29 = vrot.slane %v419_v16, %v405_v26 }
  0x24   : > { %vm428_vm4 = vcmp.eq.s32.totalorder %v423_v28, 1 }
  0x25   : > { %366 = vmatpush1.bf16.msra.mxu0 %v594_v13  ;;  %vm429_vm5 = vcmp.eq.s32.totalorder %v427_v29, 1 }
  0x26   : > { %367 = vmatprep.subr.bf16.mxu0 %v595_v14 }
  0x29   : > { %368 = vmatpush1.bf16.msra.mxu0 %v597_v17 }
  0x2c   : > { %557 = vmatmul.mubr.msk.bf16.vlgmr.msra.gmra.mxu0 %vm342_vm2, %v311_v18 }
  0x2e   : > { %v599_v21 = vpop.eup %598 }
  0x2f   : > { %v402_v25 = vrot.slane %v599_v21, %v401_v22  ;;  %v406_v27 = vrot.slane %v599_v21, %v405_v26 }
  0x99   : > { %v415_v31 = vpop.permute.xlu0 %414 }
  0xec   : > { %v387_v30 = vpop.f32.mrf.mxu0 }
  0xed   : > { %v409_v32 = vmul.f32 %v402_v25, %v387_v30 }
  0xee   : > { %v389_v33 = vpop.f32.mrf.mxu0 }
  0xef   : > { %v417_v34 = vadd.f32 %v415_v31, %v409_v32  ;;  %v410_v35 = vmul.f32 %v406_v27, %v389_v33 }
  0xf0   : > { %v391_v36 = vpop.f32.mrf.mxu0 }
  0xf1   : > { %v430_v37 = vsel %vm428_vm4, 0.0, %v417_v34  ;;  %v418_v38 = vadd.f32 %v415_v31, %v410_v35 }
  0xf2   : > { %432 = vst [vmem:[%s303_s28] sm:$0xff] %v430_v37  ;;  %v392_v39 = vpop.f32.mrf.mxu0 }
  0xf3   : > { %v431_v40 = vsel %vm429_vm5, 0.0, %v418_v38 }
  0xf4   : > { %433 = vst [vmem:[%s303_s28 + $0x8] sm:$0xff] %v431_v40 }
  0xf5 PF: > { %p13_p9 = scmp.ge.s32.totalorder %s673_s22, 4   ;;  %s734_s18 = smov %s618_s19 }
  0xf6   : > { %s735_s19 = smov %s682_s25  ;;  %s736_s20 = smov %s673_s22 }
  0xf7   :  { %15 = sbr.rel (!%p13_p9) target bundleno = 2 (0x2), region = 124 }

</bundles_post_ra>
